<compile_context>
chip_gen: v5e
topology: v5e:2x2
jax: 0.10.0
libtpu: 0.0.40
codegen_flags: <defaults>
</compile_context>

<pallas_src>
import functools
import math

import jax
import jax.numpy as jnp
from jax.experimental import pallas as pl
from jax.experimental.pallas import tpu as pltpu


def bpr_loss_kernel(u_ref, p_ref, n_ref, o_ref, nls_acc, sq_acc, *,
                    batch, weight_decay, tile_rows, tiles_per_split):
    c = pl.program_id(0)        # core-split axis ("parallel")
    t = pl.program_id(1)        # batch-tile reduction axis ("arbitrary")

    @pl.when(t == 0)
    def _():
        nls_acc[...] = jnp.zeros_like(nls_acc)
        sq_acc[...] = jnp.zeros_like(sq_acc)

    u = u_ref[...].astype(jnp.float32)   # (TB, D)
    p = p_ref[...].astype(jnp.float32)
    n = n_ref[...].astype(jnp.float32)

    # Fused squared-norm partial sum (padded rows are zero -> contribute 0).
    sq = jnp.sum(u * u + p * p + n * n, axis=(0, 1), keepdims=True)     # (1, 1)

    # x = <u, p - n>  (one VPU multiply + one row reduction instead of two).
    x = jnp.sum(u * (p - n), axis=-1, keepdims=True)                    # (TB, 1)

    # -logsigmoid(x) = softplus(-x) = max(-x, 0) + log1p(exp(-|x|))  (stable)
    nls = jnp.maximum(-x, 0.0) + jnp.log1p(jnp.exp(-jnp.abs(x)))        # (TB, 1)

    # Mask padded batch rows (they would otherwise contribute log(2) each).
    base = (c * tiles_per_split + t) * tile_rows
    rows = base + jax.lax.broadcasted_iota(jnp.int32, (tile_rows, 1), 0)
    nls = jnp.where(rows < batch, nls, 0.0)

    nls_acc[...] += jnp.sum(nls, axis=(0, 1), keepdims=True)
    sq_acc[...] += sq

    @pl.when(t == tiles_per_split - 1)
    def _():
        # Per-split partial of B*loss:  sum_nls + weight_decay * 0.5 * sum_sq
        combined = (nls_acc[...]
                    + (0.5 * weight_decay) * sq_acc[...]).reshape(1, 1, 1)
        mask = ((jax.lax.broadcasted_iota(jnp.int32, (1, 8, 128), 1) == 0)
                & (jax.lax.broadcasted_iota(jnp.int32, (1, 8, 128), 2) == 0))
        o_ref[...] = jnp.where(mask, combined, 0.0)   # value at [0, 0, 0]


def _round_up(x, m):
    return ((x + m - 1) // m) * m


def bpr_forward(user_embedding, item_embedding, users, positive_items,
                negative_items, weight_decay, *, num_core_splits=2,
                max_tile_rows=1024, vmem_budget_bytes=8 * 1024 * 1024):
    # Embedding-row gathers stay in plain JAX (indexing glue).
    # TODO(synk): fuse the gathers into the kernel (scalar-prefetch the index
    # vectors + per-tile DMA gather from the HBM embedding tables) to remove
    # the (B, D) HBM intermediates; kept in plain JAX here for simplicity.
    u = user_embedding[users]            # (B, D), native dtype
    p = item_embedding[positive_items]   # (B, D)
    n = item_embedding[negative_items]   # (B, D)

    B, D = u.shape
    itemsize = jnp.dtype(u.dtype).itemsize

    NC = num_core_splits
    per_split = pl.cdiv(B, NC)
    # Size tile rows so 3 inputs x 2 pipeline buffers fit the VMEM budget
    # (conservative for v7x's 64 MiB physical / 32 MiB default-scoped VMEM).
    tb = vmem_budget_bytes // (6 * D * itemsize)
    tb = max(8, min(max_tile_rows, (tb // 8) * 8))
    tb = min(tb, _round_up(per_split, 8))
    tiles_per_split = pl.cdiv(per_split, tb)
    B_pad = NC * tiles_per_split * tb

    if B_pad != B:
        pad = ((0, B_pad - B), (0, 0))
        u = jnp.pad(u, pad)
        p = jnp.pad(p, pad)
        n = jnp.pad(n, pad)

    kernel = functools.partial(
        bpr_loss_kernel, batch=B, weight_decay=float(weight_decay),
        tile_rows=tb, tiles_per_split=tiles_per_split)

    in_spec = pl.BlockSpec((tb, D), lambda c, t: (c * tiles_per_split + t, 0))

    cost = pl.CostEstimate(
        flops=8 * B * D,
        transcendentals=2 * B,
        bytes_accessed=3 * B * D * itemsize + NC * 8 * 128 * 4)

    partials = pl.pallas_call(
        kernel,
        out_shape=jax.ShapeDtypeStruct((NC, 8, 128), jnp.float32),
        grid_spec=pltpu.PrefetchScalarGridSpec(
            num_scalar_prefetch=0,
            grid=(NC, tiles_per_split),
            in_specs=[in_spec, in_spec, in_spec],
            out_specs=pl.BlockSpec((1, 8, 128), lambda c, t: (c, 0, 0)),
            scratch_shapes=[pltpu.VMEM((1, 1), jnp.float32),
                            pltpu.VMEM((1, 1), jnp.float32)],
        ),
        compiler_params=pltpu.CompilerParams(
            dimension_semantics=("parallel", "arbitrary")),
        cost_estimate=cost,
    )(u, p, n)

    # loss = (sum_nls + weight_decay * 0.5 * sum_sq) / B
    return jnp.sum(partials[:, 0, 0]) / B


def bpr_forward_ref(user_embedding, item_embedding, users, positive_items,
                    negative_items, weight_decay):
    u = user_embedding[users]
    p = item_embedding[positive_items]
    n = item_embedding[negative_items]
    B = users.shape[0]
    reg = 0.5 * (jnp.sum(u ** 2) + jnp.sum(p ** 2) + jnp.sum(n ** 2)) / B
    pos = jnp.sum(u * p, axis=-1)
    neg = jnp.sum(u * n, axis=-1)
    loss = jnp.mean(-jax.nn.log_sigmoid(pos - neg))
    return loss + weight_decay * reg


if __name__ == "__main__":
    # Synthetic "flags_obj" config.
    num_users = 64
    num_items = 128
    embedding_dim = 32
    weight_decay = 1e-4
    batch = 8

    key = jax.random.PRNGKey(0)
    k_user, k_item, k_u, k_p, k_n = jax.random.split(key, 5)

    # Deterministic init, matching nn init: uniform(-stdv, stdv), stdv = 1/sqrt(D)
    stdv = 1.0 / math.sqrt(embedding_dim)
    user_embedding = jax.random.uniform(
        k_user, (num_users, embedding_dim), jnp.float32, -stdv, stdv)
    item_embedding = jax.random.uniform(
        k_item, (num_items, embedding_dim), jnp.float32, -stdv, stdv)

    users = jax.random.randint(k_u, (batch,), 0, num_users, jnp.int32)
    positive_items = jax.random.randint(k_p, (batch,), 0, num_items, jnp.int32)
    negative_items = jax.random.randint(k_n, (batch,), 0, num_items, jnp.int32)

    loss = bpr_forward(user_embedding, item_embedding, users, positive_items,
                       negative_items, weight_decay)
    loss = jax.block_until_ready(loss)

    ref = bpr_forward_ref(user_embedding, item_embedding, users,
                          positive_items, negative_items, weight_decay)
    ref = jax.block_until_ready(ref)

    assert jnp.allclose(loss, ref, rtol=1e-5, atol=1e-6), (loss, ref)
    print("KERNEL_OK")
</pallas_src>

<mosaic_0001>
module attributes {stable_mosaic.version = 11 : i64} {
  func.func @bpr_loss_kernel(%arg0: i32, %arg1: i32, %arg2: memref<8x32xf32, #tpu.memory_space<vmem>>, %arg3: memref<8x32xf32, #tpu.memory_space<vmem>>, %arg4: memref<8x32xf32, #tpu.memory_space<vmem>>, %arg5: memref<1x8x128xf32, #tpu.memory_space<vmem>>, %arg6: memref<1x1xf32, #tpu.memory_space<vmem>>, %arg7: memref<1x1xf32, #tpu.memory_space<vmem>>) attributes {dimension_semantics = [#tpu.dimension_semantics<parallel>, #tpu.dimension_semantics<arbitrary>], iteration_bounds = array<i64: 2, 1>, scalar_prefetch = 0 : i64, scratch_operands = 2 : i64, tpu.core_type = #tpu.core_type<tc>, window_params = [{transform_indices = @transform_0, window_bounds = array<i64: 8, 32>}, {transform_indices = @transform_1, window_bounds = array<i64: 8, 32>}, {transform_indices = @transform_2, window_bounds = array<i64: 8, 32>}, {transform_indices = @transform_3, window_bounds = array<i64: 1, 8, 128>}]} {
    %c0_i32 = arith.constant 0 : i32
    %0 = arith.cmpi eq, %arg1, %c0_i32 : i32
    %1 = arith.extui %0 : i1 to i32
    %c0_i32_0 = arith.constant 0 : i32
    %2 = arith.cmpi ne, %1, %c0_i32_0 : i32
    scf.if %2 {
      %cst_23 = arith.constant 0.000000e+00 : f32
      %54 = vector.broadcast %cst_23 : f32 to vector<1x1xf32>
      %c0_24 = arith.constant 0 : index
      %c0_25 = arith.constant 0 : index
      %55 = vector.load %arg6[%c0_24, %c0_25] : memref<1x1xf32, #tpu.memory_space<vmem>>, vector<1x1xf32>
      tpu.vector_store %arg6[%c0_24, %c0_25], %54 {strides = array<i32>} : memref<1x1xf32, #tpu.memory_space<vmem>>, vector<1x1xf32>,
      %cst_26 = arith.constant 0.000000e+00 : f32
      %56 = vector.broadcast %cst_26 : f32 to vector<1x1xf32>
      %c0_27 = arith.constant 0 : index
      %c0_28 = arith.constant 0 : index
      %57 = vector.load %arg7[%c0_27, %c0_28] : memref<1x1xf32, #tpu.memory_space<vmem>>, vector<1x1xf32>
      tpu.vector_store %arg7[%c0_27, %c0_28], %56 {strides = array<i32>} : memref<1x1xf32, #tpu.memory_space<vmem>>, vector<1x1xf32>,
    } else {
    }
    %c0 = arith.constant 0 : index
    %c0_1 = arith.constant 0 : index
    %3 = vector.load %arg2[%c0, %c0_1] : memref<8x32xf32, #tpu.memory_space<vmem>>, vector<8x32xf32>
    %c0_2 = arith.constant 0 : index
    %c0_3 = arith.constant 0 : index
    %4 = vector.load %arg3[%c0_2, %c0_3] : memref<8x32xf32, #tpu.memory_space<vmem>>, vector<8x32xf32>
    %c0_4 = arith.constant 0 : index
    %c0_5 = arith.constant 0 : index
    %5 = vector.load %arg4[%c0_4, %c0_5] : memref<8x32xf32, #tpu.memory_space<vmem>>, vector<8x32xf32>
    %6 = arith.mulf %3, %3 : vector<8x32xf32>
    %7 = arith.mulf %4, %4 : vector<8x32xf32>
    %8 = arith.addf %6, %7 : vector<8x32xf32>
    %9 = arith.mulf %5, %5 : vector<8x32xf32>
    %10 = arith.addf %8, %9 : vector<8x32xf32>
    %11 = vector.shape_cast %10 : vector<8x32xf32> to vector<1x8x32xf32>
    %cst = arith.constant dense<0.000000e+00> : vector<1xf32>
    %12 = vector.multi_reduction <add>, %11, %cst [1, 2] : vector<1x8x32xf32> to vector<1xf32>
    %13 = vector.shape_cast %12 : vector<1xf32> to vector<1x1x1xf32>
    %14 = vector.extract %13[0, 0, 0] : f32 from vector<1x1x1xf32>
    %15 = vector.broadcast %14 : f32 to vector<1x1xf32>
    %16 = arith.subf %4, %5 : vector<8x32xf32>
    %17 = arith.mulf %3, %16 : vector<8x32xf32>
    %cst_6 = arith.constant dense<0.000000e+00> : vector<8xf32>
    %18 = vector.multi_reduction <add>, %17, %cst_6 [1] : vector<8x32xf32> to vector<8xf32>
    %19 = vector.shape_cast %18 : vector<8xf32> to vector<8x1xf32>
    %cst_7 = arith.constant 0.000000e+00 : f32
    %20 = vector.broadcast %cst_7 : f32 to vector<8x1xf32>
    %21 = arith.subf %20, %19 : vector<8x1xf32>
    %cst_8 = arith.constant 0.000000e+00 : f32
    %22 = vector.broadcast %cst_8 : f32 to vector<8x1xf32>
    %23 = arith.maximumf %21, %22 : vector<8x1xf32>
    %24 = math.absf %19 : vector<8x1xf32>
    %cst_9 = arith.constant 0.000000e+00 : f32
    %25 = vector.broadcast %cst_9 : f32 to vector<8x1xf32>
    %26 = arith.subf %25, %24 : vector<8x1xf32>
    %27 = math.exp %26 : vector<8x1xf32>
    %28 = math.log1p %27 : vector<8x1xf32>
    %29 = arith.addf %23, %28 : vector<8x1xf32>
    %c1_i32 = arith.constant 1 : i32
    %30 = arith.muli %arg0, %c1_i32 : i32
    %31 = arith.addi %30, %arg1 : i32
    %c8_i32 = arith.constant 8 : i32
    %32 = arith.muli %31, %c8_i32 : i32
    %33 = tpu.iota {dimensions = array<i32: 0>} : vector<8x1xi32>
    %34 = vector.broadcast %32 : i32 to vector<8x1xi32>
    %35 = arith.addi %34, %33 : vector<8x1xi32>
    %c8_i32_10 = arith.constant 8 : i32
    %36 = vector.broadcast %c8_i32_10 : i32 to vector<8x1xi32>
    %37 = arith.cmpi slt, %35, %36 : vector<8x1xi32>
    %cst_11 = arith.constant 0.000000e+00 : f32
    %38 = vector.broadcast %cst_11 : f32 to vector<8x1xf32>
    %39 = arith.select %37, %29, %38 : vector<8x1xi1>, vector<8x1xf32>
    %c0_12 = arith.constant 0 : index
    %c0_13 = arith.constant 0 : index
    %40 = vector.load %arg6[%c0_12, %c0_13] : memref<1x1xf32, #tpu.memory_space<vmem>>, vector<1x1xf32>
    %41 = vector.shape_cast %39 : vector<8x1xf32> to vector<1x8x1xf32>
    %cst_14 = arith.constant dense<0.000000e+00> : vector<1xf32>
    %42 = vector.multi_reduction <add>, %41, %cst_14 [1, 2] : vector<1x8x1xf32> to vector<1xf32>
    %43 = vector.shape_cast %42 : vector<1xf32> to vector<1x1x1xf32>
    %44 = vector.extract %43[0, 0, 0] : f32 from vector<1x1x1xf32>
    %45 = vector.broadcast %44 : f32 to vector<1x1xf32>
    %46 = arith.addf %40, %45 : vector<1x1xf32>
    %c0_15 = arith.constant 0 : index
    %c0_16 = arith.constant 0 : index
    %47 = vector.load %arg6[%c0_15, %c0_16] : memref<1x1xf32, #tpu.memory_space<vmem>>, vector<1x1xf32>
    tpu.vector_store %arg6[%c0_15, %c0_16], %46 {strides = array<i32>} : memref<1x1xf32, #tpu.memory_space<vmem>>, vector<1x1xf32>,
    %c0_17 = arith.constant 0 : index
    %c0_18 = arith.constant 0 : index
    %48 = vector.load %arg7[%c0_17, %c0_18] : memref<1x1xf32, #tpu.memory_space<vmem>>, vector<1x1xf32>
    %49 = arith.addf %48, %15 : vector<1x1xf32>
    %c0_19 = arith.constant 0 : index
    %c0_20 = arith.constant 0 : index
    %50 = vector.load %arg7[%c0_19, %c0_20] : memref<1x1xf32, #tpu.memory_space<vmem>>, vector<1x1xf32>
    tpu.vector_store %arg7[%c0_19, %c0_20], %49 {strides = array<i32>} : memref<1x1xf32, #tpu.memory_space<vmem>>, vector<1x1xf32>,
    %c0_i32_21 = arith.constant 0 : i32
    %51 = arith.cmpi eq, %arg1, %c0_i32_21 : i32
    %52 = arith.extui %51 : i1 to i32
    %c0_i32_22 = arith.constant 0 : i32
    %53 = arith.cmpi ne, %52, %c0_i32_22 : i32
    scf.if %53 {
      %c0_23 = arith.constant 0 : index
      %c0_24 = arith.constant 0 : index
      %54 = vector.load %arg6[%c0_23, %c0_24] : memref<1x1xf32, #tpu.memory_space<vmem>>, vector<1x1xf32>
      %c0_25 = arith.constant 0 : index
      %c0_26 = arith.constant 0 : index
      %55 = vector.load %arg7[%c0_25, %c0_26] : memref<1x1xf32, #tpu.memory_space<vmem>>, vector<1x1xf32>
      %cst_27 = arith.constant 5.000000e-05 : f32
      %56 = vector.broadcast %cst_27 : f32 to vector<1x1xf32>
      %57 = arith.mulf %56, %55 : vector<1x1xf32>
      %58 = arith.addf %54, %57 : vector<1x1xf32>
      %59 = vector.shape_cast %58 : vector<1x1xf32> to vector<1x1x1xf32>
      %60 = tpu.iota {dimensions = array<i32: 1>} : vector<1x8x128xi32>
      %c0_i32_28 = arith.constant 0 : i32
      %61 = vector.broadcast %c0_i32_28 : i32 to vector<1x8x128xi32>
      %62 = arith.cmpi eq, %60, %61 : vector<1x8x128xi32>
      %63 = tpu.iota {dimensions = array<i32: 2>} : vector<1x8x128xi32>
      %c0_i32_29 = arith.constant 0 : i32
      %64 = vector.broadcast %c0_i32_29 : i32 to vector<1x8x128xi32>
      %65 = arith.cmpi eq, %63, %64 : vector<1x8x128xi32>
      %66 = arith.andi %62, %65 : vector<1x8x128xi1>
      %cst_30 = arith.constant 0.000000e+00 : f32
      %67 = vector.shape_cast %59 : vector<1x1x1xf32> to vector<1x1x1xf32>
      %68 = vector.broadcast %67 : vector<1x1x1xf32> to vector<1x8x128xf32>
      %69 = vector.broadcast %cst_30 : f32 to vector<1x8x128xf32>
      %70 = arith.select %66, %68, %69 : vector<1x8x128xi1>, vector<1x8x128xf32>
      %c0_31 = arith.constant 0 : index
      %c0_32 = arith.constant 0 : index
      %c0_33 = arith.constant 0 : index
      %71 = vector.load %arg5[%c0_31, %c0_32, %c0_33] : memref<1x8x128xf32, #tpu.memory_space<vmem>>, vector<1x8x128xf32>
      tpu.vector_store %arg5[%c0_31, %c0_32, %c0_33], %70 {strides = array<i32>} : memref<1x8x128xf32, #tpu.memory_space<vmem>>, vector<1x8x128xf32>,
    } else {
    }
    return
  }
  func.func @transform_0(%arg0: i32, %arg1: i32) -> (i32, i32) {
    %c1_i32 = arith.constant 1 : i32
    %0 = arith.muli %arg0, %c1_i32 : i32
    %1 = arith.addi %0, %arg1 : i32
    %c0_i32 = arith.constant 0 : i32
    %c0_i32_0 = arith.constant 0 : i32
    return %1, %c0_i32 : i32, i32
  }
  func.func @transform_1(%arg0: i32, %arg1: i32) -> (i32, i32) {
    %c1_i32 = arith.constant 1 : i32
    %0 = arith.muli %arg0, %c1_i32 : i32
    %1 = arith.addi %0, %arg1 : i32
    %c0_i32 = arith.constant 0 : i32
    %c0_i32_0 = arith.constant 0 : i32
    return %1, %c0_i32 : i32, i32
  }
  func.func @transform_2(%arg0: i32, %arg1: i32) -> (i32, i32) {
    %c1_i32 = arith.constant 1 : i32
    %0 = arith.muli %arg0, %c1_i32 : i32
    %1 = arith.addi %0, %arg1 : i32
    %c0_i32 = arith.constant 0 : i32
    %c0_i32_0 = arith.constant 0 : i32
    return %1, %c0_i32 : i32, i32
  }
  func.func @transform_3(%arg0: i32, %arg1: i32) -> (i32, i32, i32) {
    %c0_i32 = arith.constant 0 : i32
    %c0_i32_0 = arith.constant 0 : i32
    %c0_i32_1 = arith.constant 0 : i32
    return %arg0, %c0_i32, %c0_i32_0 : i32, i32, i32
  }
}

</mosaic_0001>

<bundles_post_ra>
// kernel: tpu_custom_call.1
= control target key start
LH: loop header
LB: loop body
LE: loop exit
PB: predicated region body
PF: predicated region fallthrough
CT: control target
= control target key end

     0   :  { %s996_s0 = inlined_call_operand.hbm [shape: f32[16,32], index: 0, kind: input, shape index: {}]   ;;  %s997_s1 = inlined_call_operand.hbm [shape: f32[16,32], index: 1, kind: input, shape index: {}]   ;;  %s998_s2 = inlined_call_operand.hbm [shape: f32[16,32], index: 2, kind: input, shape index: {}]   ;;  %s999_s3 = inlined_call_operand.hbm [shape: f32[2,8,128], index: 3, kind: output, shape index: {}]  }
   0x1   :  { %1002 = sst [smem:[#allocation17_spill]] %s997_s1 }
   0x2   :  { %8 = vsyncpa [#allocation5], 0 }
   0x3   :  { %10 = vsyncpa [#allocation5 + $0x1], 0 }
   0x4   :  { %11 = vsyncpa [#allocation8], 0 }
   0x5   :  { %13 = vsyncpa [#allocation8 + $0x1], 0 }
   0x6   :  { %14 = vsyncpa [#allocation6], 0 }
   0x7   :  { %16 = vsyncpa [#allocation6 + $0x1], 0  ;;  %s826_s12 = smov 0   ;;  %s828_s13 = smov 0  }
   0x8   :  { %s830_s14 = smov 0   ;;  %s832_s15 = smov 0  }
   0x9   :  { %s834_s16 = smov 0   ;;  %s836_s17 = smov 0  }
   0xa LB: > { %1003 = sst [smem:[#allocation14_spill]] %s798_s16  ;;  %s857_s18 = sadd.s32 4294967295, %s802_s17   ;;  %s802_s17 = sphi %s836_s17, %s22_s17   ;;  %s798_s16 = sphi %s834_s16, %s1015_s16   ;;  %s794_s15 = sphi %s832_s15, %s1014_s15   ;;  %s790_s14 = sphi %s830_s14, %s1018_s14   ;;  %s786_s13 = sphi %s828_s13, %s1017_s13   ;;  %s782_s12 = sphi %s826_s12, %s1016_s12  }
   0xb   : > { %s523_s19 = sadd.s32 4294967294, %s802_s17   ;;  %s34_s20 = sadd.s32 1, %s798_s16 }
   0xc   : > { %s43_s21 = sadd.s32 1, %s790_s14  ;;  %p36_p0 = scmp.ge.s32.totalorder %s34_s20, 2 }
   0xd   : > { %p50_p1 = scmp.ne.s32.totalorder %s790_s14, %s786_s13  ;;  %p51_p2 = scmp.eq.s32.totalorder %s802_s17, 0 }
   0xe   : > { %p56_p3 = scmp.ne.s32.totalorder %s786_s13, %s782_s12  ;;  %s1020_s20 = smov (%p36_p0, %s34_s20), 0 }
   0xf   : > { %1004 = sst [smem:[#allocation15_spill]] %s1020_s20  ;;  %p869_p4 = por %p51_p2, %p50_p1 }
  0x10   : > { %p57_p5 = scmp.eq.s32.totalorder %s857_s18, 0  ;;  %s40_s23 = ssub.s32 %s798_s16, %s1020_s20 }
  0x11   : > { %p136_p6 = scmp.eq.s32.totalorder %s857_s18, 1  ;;  %p41_p7 = scmp.eq.s32.totalorder %s40_s23, 0 }
  0x12   : > { %p877_p8 = por %p57_p5, %p56_p3  ;;  %p142_p10 = scmp.eq.s32.totalorder %s523_s19, 1 }
  0x13   : > { %p881_p9 = por %p136_p6, %p50_p1  ;;  %p525_p12 = scmp.ge.s32.totalorder %s802_s17, 2 }
  0x14   : > { %s886_s26 = scalar_select %p41_p7, %s790_s14, %s43_s21  }
  0x15   : > { %p888_p11 = por %p142_p10, %p56_p3  ;;  %p568_p13 = scmp.lt.s32.totalorder %s802_s17, 2 }
  0x16   : > { %1008 = sst [smem:[#allocation16_spill]] %s886_s26  ;;  %s162_s28 = sand.u32 1, %s790_s14  }
  0x17   : > { %s526_s29 = sshll.u32 %s162_s28, 3  ;;  %s527_s30 = sshll.u32 %s798_s16, 3 }
  0x18   : > { %p898_p0 = pnand %p568_p13, %p869_p4  ;;  %s182_s5 = sand.u32 1, %s802_s17  }
  0x19   : > { %s1011_s1 = sld [smem:[#allocation17_spill]]  ;;  %s186_s10 = scalar_lea.vmem [#allocation7], %s526_s29 }
  0x1a   : > { %s195_s11 = sshll.u32 %s186_s10, 4  ;;  %s183_s19 = scalar_lea.sflag [#allocation8], %s182_s5  ;;  %s196_s11 = int_to_ptr.vmem [resolvable:$true] %s195_s11 }
  0x1b   : > { %p532_p1 = scmp.ge.s32.totalorder %s802_s17, 1  ;;  %p220_p2 = scmp.lt.s32.totalorder %s802_s17, 3 }
  0x1c   : > { %s171_s6 = scalar_lea.hbm %s996_s0, %s527_s30  ;;  %s163_s10 = scalar_lea.sflag [#allocation5], %s162_s28 }
  0x1d   : > { %p910_p3 = pnand %p532_p1, %p220_p2  ;;  %s173_s7 = sshll.u32 %s171_s6, 4  ;;  %s174_s7 = int_to_ptr.hbm [resolvable:$true] %s173_s7 }
  0x1e   : > { %s206_s16 = scalar_lea.vmem [#allocation9], %s526_s29  ;;  %s927_s22 = sand.u32 (!%p910_p3), 1, %s786_s13  }
  0x1f   : > { %s191_s8 = scalar_lea.hbm %s1011_s1, %s527_s30  ;;  %s215_s26 = sshll.u32 %s206_s16, 4  ;;  %s216_s26 = int_to_ptr.vmem [resolvable:$true] %s215_s26 }
  0x20   : > { %s193_s9 = sshll.u32 %s191_s8, 4  ;;  %s166_s8 = scalar_lea.vmem [#allocation4], %s526_s29  ;;  %s194_s9 = int_to_ptr.hbm [resolvable:$true] %s193_s9 }
  0x21   : > { %560 = dma.hbm_to_vmem [thread:$0]  (!%p898_p0), %s194_s9, 128, %s196_s11, %s183_s19  }
  0x22   : > { %s175_s1 = sshll.u32 %s166_s8, 4  ;;  %s211_s11 = scalar_lea.hbm %s998_s2, %s527_s30  ;;  %s176_s1 = int_to_ptr.vmem [resolvable:$true] %s175_s1 }
  0x23   : > { %557 = dma.hbm_to_vmem [thread:$0]  (!%p898_p0), %s174_s7, 128, %s176_s1, %s163_s10  }
  0x24   : > { %s213_s20 = sshll.u32 %s211_s11, 4  ;;  %224 = sbr.rel (%p910_p3) target bundleno = 509 (0x1fd), region = 32  ;;  %s214_s20 = int_to_ptr.hbm [resolvable:$true] %s213_s20 }
  0x25   : > { %563 = dma.hbm_to_vmem [thread:$0]  (!%p898_p0), %s214_s20, 128, %s216_s26, %s183_s19  }
  0x26   : > { %s930_s1 = sshll.u32 (!%p910_p3), %s927_s22, 3  ;;  %s227_s28 = scalar_lea.sflag (!%p910_p3), [#allocation5], %s927_s22 }
  0x27   : > { %s230_s30 = scalar_lea.vmem (!%p910_p3), [#allocation4], %s930_s1 }
  0x29   : > { %769 = dma.done.wait (%p877_p8), %s227_s28, 128  }
  0x2a   : > { %771 = vsyncadd (%p877_p8), %s227_s28, 4294967168  ;;  %s236_s16 = sand.u32 1, %s857_s18   ;;  %s240_s26 = scalar_lea.vmem [#allocation7], %s930_s1 }
  0x2b   : > { %s237_s20 = scalar_lea.sflag [#allocation8], %s236_s16 }
  0x2c   : > { %773 = dma.done.wait (%p877_p8), %s237_s20, 256  }
  0x2d   : > { %775 = vsyncadd (%p877_p8), %s237_s20, 4294967040  ;;  %v294_v0 = vld [vmem:[%s230_s30] sm:$0xff]  ;;  %v295_v1 = vld [vmem:[%s240_s26] sm:$0xff]  ;;  %s250_s29 = scalar_lea.vmem [#allocation9], %s930_s1  ;;  %vm302_vm0 = vcmask 261120   ;;  %v337_v17 = vlaneseq  ;;  %s537_s18 = sshll.u32 %s794_s15, 3 }
  0x2e   : > { %v296_v2 = vld [vmem:[%s250_s29] sm:$0xff]  ;;  %v298_v6 = vmul.f32 %v295_v1, %v295_v1  ;;  %v297_v7 = vmul.f32 %v294_v0, %v294_v0  ;;  %v339_v21 = vstv %s537_s18  ;;  %vm344_vm3 = vcmask 7168   ;;  %s393_s23 = scalar_lea.hbm %s999_s3, %s537_s18  ;;  %s283_s7 = scalar_lea.vmem [#allocation10], %s930_s1 }
  0x2f   : > { %v314_v3 = vsub.f32 %v295_v1, %v296_v2  ;;  %v300_v9 = vmul.f32 %v296_v2, %v296_v2  ;;  %v946_v20 = vshrl.u32 %v337_v17, 7  ;;  %vm291_vm4 = vcmask 0   ;;  %s397_s6 = sshll.u32 %s393_s23, 4  ;;  %s395_s8 = sshll.u32 %s283_s7, 4  ;;  %s396_s8 = int_to_ptr.vmem [resolvable:$true] %s395_s8  ;;  %s398_s6 = int_to_ptr.hbm [resolvable:$true] %s397_s6 }
  0x30   : > { %v299_v8 = vadd.f32 %v298_v6, %v297_v7  ;;  %v804_v41 = vmov 0.0   ;;  %v805_v52 = vmov 0   ;;  %v371_v61 = vand.u32 127, %v337_v17  ;;  %s383_s10 = scalar_lea.sflag [#allocation6], %s927_s22  ;;  %s730_s5 = sshra.s32 %s398_s6, 4  ;;  %s731_s5 = int_to_ptr.hbm [resolvable:$true] %s730_s5 }
  0x31   : > { %v315_v4 = vmul.f32 %v314_v3, %v294_v0  ;;  %v340_v25 = vadd.s32 %v339_v21, %v946_v20  ;;  %293 = vst.msk [vmem:[#allocation3] sm:$0x1] %vm291_vm4, %v804_v41  ;;  %620 = vset.pattern.permute.xlu1 %v805_v52  ;;  %621 = vset.pattern.permute.xlu0 %v805_v52  ;;  %vm369_vm5 = vcmp.eq.s32.totalorder %v946_v20, 0  ;;  %s732_s15 = scalar_lea.hbm %s731_s5, 8  ;;  %s736_s28 = scalar_lea.hbm %s999_s3, 16 }
  0x32   : > { %v301_v10 = vadd.f32 %v300_v9, %v299_v8  ;;  %292 = vst.msk [vmem:[#allocation2] sm:$0x1] %vm291_vm4, %v804_v41  ;;  %vm372_vm6 = vcmp.eq.s32.totalorder %v371_v61, 0  ;;  %p733_p4 = scmp.ne.s32.totalorder %s731_s5, %s732_s15  ;;  %p737_p7 = scmp.lt.s32.totalorder %s731_s5, %s999_s3 }
  0x33   : > { %v316_v5 = vsel %vm302_vm0, %v315_v4, 0.0  ;;  %vm341_vm2 = vcmp.lt.s32.totalorder %v340_v25, 8  ;;  %vm373_vm7 = vmand %vm369_vm5, %vm372_vm6  ;;  %p738_p8 = scmp.lt.s32.totalorder %s736_s28, %s732_s15 }
  0x34   : > { %317 = vadd.xlane.f32.xlu0 %v316_v5  ;;  %v303_v11 = vsel %vm302_vm0, %v301_v10, 0.0  ;;  %p734_p5 = pnand %p733_p4, %p881_p9 }
  0x35   : > { %p739_p10 = por %p738_p8, %p737_p7 }
  0x36   : > { %p735_p6 = pneg %p734_p5 }
  0x38   : > { %v359_v49 = vld [vmem:[#allocation3] sm:$0x1]  ;;  %p740_p13 = pnand %p739_p10, %p735_p6 }
  0x39   : > { %v343_v53 = vld [vmem:[#allocation2] sm:$0x1] }
  0x3c   : > { %304 = vadd.xlane.f32.xlu0 %v303_v11 }
  0xa7   : > { %v318_v12 = vpop.xlane.xlu0 %317 }
  0xa8   : > { %v321_v13 = vand.u32 2147483647, %v318_v12  ;;  %v319_v23 = vsub.f32 0.0, %v318_v12 }
  0xaa   : > { %v322_v14 = vsub.f32 0.0, %v321_v13  ;;  %v320_v29 = vmax.f32 %v319_v23, 0.0 }
  0xac   : > { %v323_v15 = vmul.f32 1.442695, %v322_v14 }
  0xae   : > { %622 = vpow2.f32 %v323_v15 }
  0xaf   : > { %v305_v34 = vpop.xlane.xlu0 %304 }
  0xb0   : > { %v306_v35 = vrot.slane %v305_v34, 4 }
  0xb2   : > { %v307_v36 = vadd.f32 %v306_v35, %v305_v34 }
  0xb4   : > { %v623_v16 = vpop.eup %622  ;;  %v308_v37 = vrot.slane %v307_v36, 2 }
  0xb5   : > { %v325_v18 = vadd.f32 1.0, %v623_v16  ;;  %v328_v19 = vmul.f32 -0.5, %v623_v16  ;;  %v331_v24 = vand.u32 2147483647, %v623_v16 }
  0xb6   : > { %v309_v38 = vadd.f32 %v308_v37, %v307_v36 }
  0xb7   : > { %624 = vlog2.f32 %v325_v18  ;;  %v329_v22 = vadd.f32 1.0, %v328_v19  ;;  %vm332_vm1 = vcmp.lt.f32.partialorder %v331_v24, 0.0004427343 }
  0xb8   : > { %v310_v39 = vrot.slane %v309_v38, 1 }
  0xb9   : > { %v330_v28 = vmul.f32 %v623_v16, %v329_v22 }
  0xba   : > { %v311_v40 = vadd.f32 %v310_v39, %v309_v38 }
  0xbc   : > { %542 = vpush %v311_v40 }
  0xbd   : > { %v625_v26 = vpop.eup %624 }
  0xbe   : > { %v327_v27 = vmul.f32 0.6931472, %v625_v26 }
  0xc0   : > { %v333_v30 = vsel %vm332_vm1, %v330_v28, %v327_v27 }
  0xc1   : > { %v334_v31 = vadd.f32 %v333_v30, %v320_v29 }
  0xc3   : > { %v342_v32 = vsel %vm341_vm2, %v334_v31, 0.0 }
  0xc4   : > { %v345_v33 = vsel %vm344_vm3, %v342_v32, 0.0 }
  0xc5   : > { %346 = vadd.xlane.f32.xlu1 %v345_v33 }
  0xed   : > { %s543_s24 = spop %542 }
  0xee   : > { %v313_v50 = vstv %s543_s24 }
  0xef   : > { %v360_v51 = vadd.f32 %v359_v49, %v313_v50 }
  0xf1   : > { %361 = vst.msk [vmem:[#allocation3] sm:$0x1] %vm291_vm4, %v360_v51 }
  0xf8   : > { %v366_v56 = vld [vmem:[#allocation3] sm:$0x1] }
  0xf9   : > { %v367_v57 = vmul.f32 5e-05, %v366_v56 }
 0x138   : > { %v347_v42 = vpop.xlane.xlu1 %346 }
 0x139   : > { %v348_v43 = vrot.slane %v347_v42, 4 }
 0x13b   : > { %v349_v44 = vadd.f32 %v348_v43, %v347_v42 }
 0x13d   : > { %v350_v45 = vrot.slane %v349_v44, 2 }
 0x13f   : > { %v351_v46 = vadd.f32 %v350_v45, %v349_v44 }
 0x141   : > { %v352_v47 = vrot.slane %v351_v46, 1 }
 0x143   : > { %v353_v48 = vadd.f32 %v352_v47, %v351_v46 }
 0x145   : > { %544 = vpush %v353_v48 }
 0x176   : > { %s545_s4 = spop %544 }
 0x177   : > { %v355_v54 = vstv %s545_s4 }
 0x178   : > { %v356_v55 = vadd.f32 %v355_v54, %v343_v53 }
 0x17a   : > { %358 = vst.msk [vmem:[#allocation2] sm:$0x1] %vm291_vm4, %v356_v55 }
 0x181   : > { %v365_v58 = vld [vmem:[#allocation2] sm:$0x1] }
 0x182   : > { %v368_v59 = vadd.f32 %v367_v57, %v365_v58 }
 0x184   : > { %v375_v60 = vperm.slane %v368_v59, 0 }
 0x186   : > { %377 = vperm.xlu1 %620, %v375_v60  }
 0x1f8   : > { %v378_v62 = vpop.permute.xlu1 %377 }
 0x1f9   : > { %v380_v63 = vsel %vm373_vm7, %v378_v62, 0.0 }
 0x1fa   : > { %381 = vst [vmem:[%s283_s7] sm:$0xff] %v380_v63 }
 0x1fb   : > { %743 = shalt.err (!%p740_p13)
}
 0x1fc   : > { %552 = dma.vmem_to_hbm [thread:$0]  (%p881_p9), %s396_s8, 128, %s398_s6, %s383_s10  }
 0x1fd PF: > { %s409_s22 = sand.u32 1, %s782_s12   ;;  %p565_p0 = pnand %p525_p12, %p888_p11 }
 0x1fe   : > { %s410_s16 = scalar_lea.sflag [#allocation6], %s409_s22 }
 0x1ff   : > { %p566_p1 = pneg %p565_p0 }
 0x201   : > { %777 = dma.done.wait (%p566_p1), %s410_s16, 128  }
 0x202   : > { %779 = vsyncadd (%p566_p1), %s410_s16, 4294967168  ;;  %s22_s17 = sadd.s32 1, %s802_s17   ;;  %s1013_s20 = sld [smem:[#allocation16_spill]] }
 0x203   : > { %p19_p2 = scmp.ge.s32.totalorder %s22_s17, 4   ;;  %s1014_s15 = sld [smem:[#allocation14_spill]] }
 0x204   : > { %s1015_s16 = sld [smem:[#allocation15_spill]]  ;;  %s1016_s12 = smov %s786_s13 }
 0x205   : > { %s1017_s13 = smov %s790_s14  ;;  %21 = sbr.rel (!%p19_p2) target bundleno = 10 (0xa), region = 109 }
 0x208   : > { %s1018_s14 = smov %s1013_s20 }
 0x20a   :  { %416 = vsyncpa [#allocation5], 1 }
 0x20b   :  { %418 = vsyncpa [#allocation5 + $0x1], 1 }
 0x20c   :  { %419 = vsyncpa [#allocation8], 1 }
 0x20d   :  { %421 = vsyncpa [#allocation8 + $0x1], 1 }
 0x20e   :  { %422 = vsyncpa [#allocation6], 1 }
 0x20f   :  { %424 = vsyncpa [#allocation6 + $0x1], 1 }

</bundles_post_ra>
